<compile_context>
chip_gen: v6e
topology: v6e:2x2x1
jax: 0.10.0
libtpu: 0.0.40
codegen_flags: <defaults>
</compile_context>

<pallas_src>
import jax
import jax.numpy as jnp
from jax.experimental import pallas as pl
from jax.experimental.pallas import tpu as pltpu

_MiB = 1 << 20


def _rnn_dropout_kernel(x_ref, mask_ref, o_ref):
    """One grid step: x block (TB, TS, F) * mask block (TB, 1, F) -> out."""
    o_ref[...] = x_ref[...] * mask_ref[...]


def _sublane(itemsize: int) -> int:
    # Sub-32-bit dtypes pack along sublanes: bf16 wants 16-row granularity,
    # int8/fp8 want 32-row; f32 wants 8.
    return {4: 8, 2: 16, 1: 32}.get(itemsize, 8)


def _tpu_budget():
    """Return (per-tile byte target, vmem_limit_bytes, min total grid steps)."""
    kind = ""
    try:
        kind = jax.devices()[0].device_kind.lower()
    except Exception:
        pass
    if "v7" in kind:
        # 64 MiB per-TC VMEM, ~3.2 TB/s HBM, 2 TensorCores: bigger tiles, keep
        # 2x(in)+2x(out) double buffers well under 64 MiB, and demand >= 4
        # grid steps so both cores get work.
        return 8 * _MiB, 48 * _MiB, 4
    if "v5" in kind:
        # v5e: ~2 MiB tiles already sit at ~85% of HBM roofline; keep the
        # scoped-VMEM footprint modest.
        return 2 * _MiB, 32 * _MiB, 1
    # v6e / default: 128 MiB physical VMEM, single TensorCore.
    return 8 * _MiB, 64 * _MiB, 1


def _choose_tiles(B, S, F_pad, itemsize, seq_tile, batch_tile):
    """Pick (TB, TS) batch/seq block sizes and the vmem limit for this chip."""
    target_bytes, vmem_limit, min_steps = _tpu_budget()
    sub = _sublane(itemsize)
    row_bytes = max(1, F_pad * itemsize)
    # 2 x-buffers + 2 out-buffers + mask + headroom ~= 5 tiles must fit the
    # scoped-VMEM limit; cap the per-step (TB*TS) row count accordingly.
    cap_rows = max(1, (vmem_limit // 5) // row_bytes)
    target_rows = max(1, min(target_bytes // row_bytes, cap_rows))

    if seq_tile is not None or batch_tile is not None:
        # Validate user overrides: sublane alignment + VMEM budget for this
        # generation (a tile that compiled on v6e must not OOM on v7x).
        if seq_tile is None or int(seq_tile) >= S:
            TS = S
        else:
            TS = min(S, max(sub, (int(seq_tile) // sub) * sub))
        TB = 1 if batch_tile is None else max(1, min(int(batch_tile), B))
        while TB > 1 and TB * TS > cap_rows:
            TB -= 1
        while TS > sub and TB * TS > cap_rows:
            TS = max(sub, ((TS // 2) // sub) * sub)
        return TB, TS, vmem_limit

    # --- seq tile ---
    if target_rows >= S:
        TS = S
    else:
        TS = max(sub, (target_rows // sub) * sub)
        # Prefer a TS that divides S exactly: no masked partial tail tile.
        for cand in range(TS, sub - 1, -sub):
            if S % cand == 0:
                TS = cand
                break

    # --- batch tile: fold batch rows when one full-seq block is still small ---
    TB = max(1, min(B, target_rows // max(1, TS)))
    while TB > 1 and B % TB != 0:      # avoid a partial leading-dim tail block
        TB -= 1

    # --- v7x: make sure both TensorCores get grid steps ---
    def steps(tb, ts):
        return pl.cdiv(B, tb) * pl.cdiv(S, ts)

    while steps(TB, TS) < min_steps and TB > 1:
        TB = max(1, TB // 2)
        while TB > 1 and B % TB != 0:
            TB -= 1
    while steps(TB, TS) < min_steps and TS > sub:
        new_ts = max(sub, ((TS // 2) // sub) * sub)
        if new_ts >= TS:
            break
        TS = new_ts

    return TB, TS, vmem_limit


def rnn_dropout(x: jax.Array, p: float = 0.5, *, key=None, training: bool = True,
                seq_tile: int | None = None, batch_tile: int | None = None,
                donate_x: bool = False) -> jax.Array:
    """JAX/Pallas equivalent of RNNDropout.forward for x of shape (B, S, F)."""
    assert x.ndim == 3, f"Expect x of dimension 3, whereas dim x is {x.ndim}"
    if (not training) or p == 0.0:
        return x
    if p >= 1.0:
        # keep_prob == 0: everything dropped (avoids 1/(1-p) divide-by-zero).
        return jnp.zeros_like(x)

    B, S, F = x.shape
    if key is None:
        # NOTE: deterministic fallback (same mask every call). Pass a fresh key
        # per call to get torch-like stateful-RNG behaviour.
        key = jax.random.PRNGKey(0)

    keep_prob = 1.0 - float(p)
    # One value per (batch, feature), broadcast over seq_len -- matches
    # dropout_mask(x, (B, 1, F), p). Drawn/scaled in f32, then cast to x.dtype
    # (mirrors PyTorch's in-dtype mask; for bf16 the 1/(1-p) scale is rounded).
    mask = (jax.random.bernoulli(key, keep_prob, (B, 1, F)).astype(jnp.float32)
            * (1.0 / keep_prob)).astype(x.dtype)

    # Lane-dense feature dim: pad F up to a multiple of 128 so output stores
    # are full-lane `vst`; slice the pad off after the call.
    F_pad = ((F + 127) // 128) * 128
    padded = F_pad != F
    if padded:
        x_in = jnp.pad(x, ((0, 0), (0, 0), (0, F_pad - F)))
        mask_in = jnp.pad(mask, ((0, 0), (0, 0), (0, F_pad - F)))
    else:
        x_in, mask_in = x, mask

    itemsize = jnp.dtype(x.dtype).itemsize
    TB, TS, vmem_limit = _choose_tiles(B, S, F_pad, itemsize, seq_tile, batch_tile)
    grid = (pl.cdiv(B, TB), pl.cdiv(S, TS))

    out = pl.pallas_call(
        _rnn_dropout_kernel,
        out_shape=jax.ShapeDtypeStruct((B, S, F_pad), x.dtype),
        grid_spec=pltpu.PrefetchScalarGridSpec(
            num_scalar_prefetch=0,
            grid=grid,
            in_specs=[
                pl.BlockSpec((TB, TS, F_pad), lambda b, s: (b, s, 0)),
                pl.BlockSpec((TB, 1, F_pad), lambda b, s: (b, 0, 0)),
            ],
            out_specs=pl.BlockSpec((TB, TS, F_pad), lambda b, s: (b, s, 0)),
        ),
        compiler_params=pltpu.CompilerParams(
            dimension_semantics=("parallel", "parallel"),
            vmem_limit_bytes=int(vmem_limit),
        ),
        # Alias x -> out when shapes match (no padding): lets XLA reuse the
        # input buffer if the caller donated it; always correctness-safe.
        input_output_aliases=({0: 0} if (donate_x and not padded) else {}),
        # TODO(synk): on v7x, pipeline_mode=pl.Buffered(3) on the x in_spec can
        # further hide per-step DMA-issue latency at 3.2 TB/s HBM.
    )(x_in, mask_in)

    return out[..., :F] if padded else out


if __name__ == "__main__":
    def _ref(x, p, key):
        keep = 1.0 - p
        m = (jax.random.bernoulli(key, keep, (x.shape[0], 1, x.shape[2]))
             .astype(jnp.float32) * (1.0 / keep)).astype(x.dtype)
        return x * m

    root = jax.random.PRNGKey(0)
    kx, kx2, kx3 = jax.random.split(root, 3)

    # 1) Basic f32, F multiple of 128, single block.
    B, S, F = 2, 8, 128
    x = jax.random.normal(kx, (B, S, F), jnp.float32)
    p = 0.5
    mkey = jax.random.PRNGKey(1234)
    out = jax.block_until_ready(rnn_dropout(x, p=p, key=mkey, training=True))
    assert out.shape == x.shape and out.dtype == x.dtype
    assert bool(jnp.allclose(out, _ref(x, p, mkey), atol=1e-6, rtol=1e-6))

    # 2) Multi-seq-tile path (forced small seq tile); mask consistent across tiles.
    B2, S2, F2 = 2, 32, 256
    x2 = jax.random.normal(kx2, (B2, S2, F2), jnp.float32)
    mkey2 = jax.random.PRNGKey(7)
    out2 = jax.block_until_ready(rnn_dropout(x2, p=0.25, key=mkey2, seq_tile=8))
    assert bool(jnp.allclose(out2, _ref(x2, 0.25, mkey2), atol=1e-6, rtol=1e-6))

    # 3) Lane-padding path: F not a multiple of 128.
    B3, S3, F3 = 2, 16, 100
    x3 = jax.random.normal(kx3, (B3, S3, F3), jnp.float32)
    mkey3 = jax.random.PRNGKey(42)
    out3 = jax.block_until_ready(rnn_dropout(x3, p=0.5, key=mkey3))
    assert out3.shape == x3.shape
    assert bool(jnp.allclose(out3, _ref(x3, 0.5, mkey3), atol=1e-6, rtol=1e-6))

    # 4) bf16 path (16-row sublane tiles; in-dtype multiply).
    xb = x2.astype(jnp.bfloat16)
    outb = jax.block_until_ready(rnn_dropout(xb, p=0.25, key=mkey2))
    assert outb.dtype == jnp.bfloat16
    assert bool(jnp.allclose(outb.astype(jnp.float32),
                             _ref(xb, 0.25, mkey2).astype(jnp.float32),
                             atol=1e-2, rtol=1e-2))

    # 5) Aliased (donate_x) path gives the same result as the plain path.
    out_a = rnn_dropout(x2, p=0.25, key=mkey2)
    out_b = rnn_dropout(jnp.array(x2), p=0.25, key=mkey2, donate_x=True)
    assert bool(jnp.allclose(out_a, out_b, atol=1e-6, rtol=1e-6))

    # 6) Eval / p==0 / p==1 paths.
    assert bool(jnp.all(rnn_dropout(x, p=p, training=False) == x))
    assert bool(jnp.all(rnn_dropout(x, p=0.0, training=True) == x))
    assert bool(jnp.all(rnn_dropout(x, p=1.0, key=jax.random.PRNGKey(3)) == 0))

    print("KERNEL_OK")
</pallas_src>

<mosaic_0001>
module attributes {stable_mosaic.version = 11 : i64} {
  func.func @_rnn_dropout_kernel(%arg0: i32, %arg1: i32, %arg2: memref<2x8x128xf32, #tpu.memory_space<vmem>>, %arg3: memref<2x1x128xf32, #tpu.memory_space<vmem>>, %arg4: memref<2x8x128xf32, #tpu.memory_space<vmem>>) attributes {dimension_semantics = [#tpu.dimension_semantics<parallel>, #tpu.dimension_semantics<parallel>], iteration_bounds = array<i64: 1, 1>, scalar_prefetch = 0 : i64, scratch_operands = 0 : i64, tpu.core_type = #tpu.core_type<tc>, window_params = [{transform_indices = @transform_0, window_bounds = array<i64: 2, 8, 128>}, {transform_indices = @transform_1, window_bounds = array<i64: 2, 1, 128>}, {transform_indices = @transform_2, window_bounds = array<i64: 2, 8, 128>}]} {
    %c0 = arith.constant 0 : index
    %c0_0 = arith.constant 0 : index
    %c0_1 = arith.constant 0 : index
    %0 = vector.load %arg2[%c0, %c0_0, %c0_1] : memref<2x8x128xf32, #tpu.memory_space<vmem>>, vector<2x8x128xf32>
    %c0_2 = arith.constant 0 : index
    %c0_3 = arith.constant 0 : index
    %c0_4 = arith.constant 0 : index
    %1 = vector.load %arg3[%c0_2, %c0_3, %c0_4] : memref<2x1x128xf32, #tpu.memory_space<vmem>>, vector<2x1x128xf32>
    %2 = vector.broadcast %1 : vector<2x1x128xf32> to vector<2x8x128xf32>
    %3 = arith.mulf %0, %2 : vector<2x8x128xf32>
    %c0_5 = arith.constant 0 : index
    %c0_6 = arith.constant 0 : index
    %c0_7 = arith.constant 0 : index
    %4 = vector.load %arg4[%c0_5, %c0_6, %c0_7] : memref<2x8x128xf32, #tpu.memory_space<vmem>>, vector<2x8x128xf32>
    tpu.vector_store %arg4[%c0_5, %c0_6, %c0_7], %3 {strides = array<i32>} : memref<2x8x128xf32, #tpu.memory_space<vmem>>, vector<2x8x128xf32>,
    return
  }
  func.func @transform_0(%arg0: i32, %arg1: i32) -> (i32, i32, i32) {
    %c0_i32 = arith.constant 0 : i32
    %c0_i32_0 = arith.constant 0 : i32
    return %arg0, %arg1, %c0_i32 : i32, i32, i32
  }
  func.func @transform_1(%arg0: i32, %arg1: i32) -> (i32, i32, i32) {
    %c0_i32 = arith.constant 0 : i32
    %c0_i32_0 = arith.constant 0 : i32
    %c0_i32_1 = arith.constant 0 : i32
    return %arg0, %c0_i32, %c0_i32_0 : i32, i32, i32
  }
  func.func @transform_2(%arg0: i32, %arg1: i32) -> (i32, i32, i32) {
    %c0_i32 = arith.constant 0 : i32
    %c0_i32_0 = arith.constant 0 : i32
    return %arg0, %arg1, %c0_i32 : i32, i32, i32
  }
}

</mosaic_0001>

<bundles_post_ra>
// kernel: tpu_custom_call.1
= control target key start
LH: loop header
LB: loop body
LE: loop exit
PB: predicated region body
PF: predicated region fallthrough
CT: control target
= control target key end

     0   :  { %7 = vsyncpa [#allocation3], 0  ;;  %s190_s0 = inlined_call_operand.hbm [shape: f32[2,8,128], index: 0, kind: input, shape index: {}]   ;;  %s191_s1 = inlined_call_operand.hbm [shape: f32[2,1,128], index: 1, kind: input, shape index: {}]   ;;  %s192_s2 = inlined_call_operand.hbm [shape: f32[2,8,128], index: 2, kind: output, shape index: {}]  }
   0x1   :  { %8 = vsyncpa [#allocation6], 0 }
   0x2   :  { %9 = vsyncpa [#allocation4], 0  ;;  %s153_s9 = smov [#allocation2]  }
   0x3   :  { %s15_s10 = sshll.u32 %s153_s9, 4  ;;  %s16_s10 = int_to_ptr.vmem [resolvable:$true] %s15_s10 }
   0x4   :  { %s95_s11 = scalar_lea.vmem %s16_s10, 256  ;;  %p100_p1 = scmp.lt.s32.totalorder %s16_s10, %s16_s10 }
   0x5   :  { %p96_p0 = scmp.ne.s32.totalorder %s16_s10, %s95_s11  ;;  %p101_p2 = scmp.lt.s32.totalorder %s95_s11, %s95_s11 }
   0x7   :  { %p102_p3 = por %p101_p2, %p100_p1 }
   0x9   :  { %p103_p4 = pnand %p102_p3, %p96_p0 }
   0xb   :  { %106 = shalt.err (!%p103_p4)
}
   0xc   :  { %s154_s12 = smov 128   ;;  %s155_s13 = smov 8  }
   0xd   :  { %21 = dma.hbm_to_vmem [thread:$0]  %s190_s0, 256, %s16_s10, [#allocation3], %s154_s12, %s154_s12, %s155_s13  }
   0xe   :  { %s156_s16 = smov [#allocation5]  }
   0xf   :  { %s27_s17 = sshll.u32 %s156_s16, 4  ;;  %s28_s17 = int_to_ptr.vmem [resolvable:$true] %s27_s17 }
  0x10   :  { %s115_s18 = scalar_lea.vmem %s28_s17, 32  ;;  %p120_p6 = scmp.lt.s32.totalorder %s28_s17, %s28_s17 }
  0x11   :  { %p116_p5 = scmp.ne.s32.totalorder %s28_s17, %s115_s18  ;;  %p121_p7 = scmp.lt.s32.totalorder %s115_s18, %s115_s18 }
  0x13   :  { %p122_p8 = por %p121_p7, %p120_p6 }
  0x15   :  { %p123_p9 = pnand %p122_p8, %p116_p5 }
  0x17   :  { %126 = shalt.err (!%p123_p9)
}
  0x18   :  { %s157_s19 = smov 16   ;;  %s158_s20 = smov 1  }
  0x19   :  { %33 = dma.hbm_to_vmem [thread:$0]  %s191_s1, 32, %s28_s17, [#allocation6], %s157_s19, %s157_s19, %s158_s20  }
  0x1a   :  { %147 = dma.done.wait [#allocation3], 256  }
  0x1b   :  { %148 = vsyncadd [#allocation3], 4294967040 }
  0x1c   :  { %149 = dma.done.wait [#allocation6], 32  }
  0x1d   :  { %150 = vsyncadd [#allocation6], 4294967264  ;;  %s159_s0 = smov [#allocation7]   ;;  %v40_v0 = vld [vmem:[#allocation2] sm:$0xff]  ;;  %v78_v1 = vld [vmem:[#allocation5] ss:$0 sm:$0xff] }
  0x1e   :  { %s65_s23 = sshll.u32 %s159_s0, 4  ;;  %v41_v2 = vld [vmem:[#allocation2 + $0x8] sm:$0xff]  ;;  %v56_v3 = vmul.f32 %v78_v1, %v40_v0  ;;  %v79_v4 = vld [vmem:[#allocation5 + $0x1] ss:$0 sm:$0xff]  ;;  %s66_s23 = int_to_ptr.vmem [resolvable:$true] %s65_s23 }
  0x1f   :  { %v57_v5 = vmul.f32 %v79_v4, %v41_v2  ;;  %s127_s24 = scalar_lea.vmem %s66_s23, 256  ;;  %p132_p11 = scmp.lt.s32.totalorder %s66_s23, %s66_s23 }
  0x20   :  { %58 = vst [vmem:[#allocation7] sm:$0xff] %v56_v3  ;;  %p128_p10 = scmp.ne.s32.totalorder %s66_s23, %s127_s24  ;;  %p133_p12 = scmp.lt.s32.totalorder %s127_s24, %s127_s24 }
  0x21   :  { %59 = vst [vmem:[#allocation7 + $0x8] sm:$0xff] %v57_v5 }
  0x22   :  { %p134_p13 = por %p133_p12, %p132_p11 }
  0x24   :  { %p135_p0 = pnand %p134_p13, %p128_p10 }
  0x26   :  { %138 = shalt.err (!%p135_p0)
}
  0x27   :  { %71 = dma.vmem_to_hbm [thread:$0]  %s66_s23, 256, %s192_s2, [#allocation4], %s154_s12, %s154_s12, %s155_s13  }
  0x28   :  { %151 = dma.done.wait [#allocation4], 256  }
  0x29   :  { %152 = vsyncadd [#allocation4], 4294967040 }
  0x2a   :  { %75 = vsyncpa [#allocation3], 1 }
  0x2b   :  { %76 = vsyncpa [#allocation6], 1 }
  0x2c   :  { %77 = vsyncpa [#allocation4], 1 }

</bundles_post_ra>
